<compile_context>
chip_gen: v7x
topology: tpu7x:2x2x1
jax: 0.10.0
libtpu: 0.0.40
codegen_flags: <defaults>
</compile_context>

<pallas_src>
import math

import jax
import jax.numpy as jnp
from jax.experimental import pallas as pl
from jax.experimental.pallas import tpu as pltpu

EPS = 1e-5
_INV_SQRT2 = 1.0 / math.sqrt(2.0)


def _layernorm_f32(x, gamma, beta):
    mu = jnp.mean(x, axis=-1, keepdims=True)
    var = jnp.mean((x - mu) ** 2, axis=-1, keepdims=True)
    return (x - mu) * jax.lax.rsqrt(var + EPS) * gamma + beta


def _block_kernel(x_ref, g1_ref, b1_ref,
                  wqkv_ref, wproj_ref, bproj_ref,
                  g2_ref, b2_ref, w1_ref, bb1_ref, w2_ref, bb2_ref,
                  o_ref):
    x = x_ref[...]                                   # (N, C) f32 (batch squeezed)
    nh, C, e3 = wqkv_ref.shape
    hd = e3 // 3
    N = x.shape[0]

    # ---------------- norm1 (f32 stats), single bf16 cast ----------------
    h = _layernorm_f32(x, g1_ref[...], b1_ref[...])
    h16 = jnp.broadcast_to(h.astype(jnp.bfloat16), (nh, N, C))   # (nh, N, C)

    # ---------------- fused QKV projection (heads-batched, wide output) ----
    # One batched matmul with output width 3*hd; the attention scale is already
    # folded into the Q columns of wqkv in the wrapper.
    qkv = jnp.einsum("hnc,hce->hne", h16, wqkv_ref[...],
                     preferred_element_type=jnp.float32)         # (nh, N, 3*hd)
    q = qkv[:, :, :hd].astype(jnp.bfloat16)                      # (nh, N, hd)
    k = qkv[:, :, hd:2 * hd].astype(jnp.bfloat16)
    v = qkv[:, :, 2 * hd:].astype(jnp.bfloat16)

    # ---------------- heads-batched attention ----------------
    s = jnp.einsum("hnd,hmd->hnm", q, k,
                   preferred_element_type=jnp.float32)           # (nh, N, N)
    s = s - jnp.max(s, axis=-1, keepdims=True)
    p = jnp.exp(s)
    # Approx reciprocal -> EUP slot (free vs. a VPU divide on the critical path).
    p = p * pl.reciprocal(jnp.sum(p, axis=-1, keepdims=True), approx=True)

    o_h = jnp.einsum("hnm,hmd->hnd", p.astype(jnp.bfloat16), v,
                     preferred_element_type=jnp.float32)         # (nh, N, hd)

    # Output projection: per-head partial projections (batched matmul), then a
    # cheap reduce over heads -> lane-dense (N, C) result, no masked stores.
    a = jnp.einsum("hnd,hdc->hnc", o_h.astype(jnp.bfloat16), wproj_ref[...],
                   preferred_element_type=jnp.float32)           # (nh, N, C)
    x1 = x + jnp.sum(a, axis=0) + bproj_ref[...]                 # first residual

    # ---------------- norm2 + MLP ----------------
    h2 = _layernorm_f32(x1, g2_ref[...], b2_ref[...]).astype(jnp.bfloat16)
    f = jnp.dot(h2, w1_ref[...], preferred_element_type=jnp.float32) + bb1_ref[...]
    f = 0.5 * f * (1.0 + jax.lax.erf(f * _INV_SQRT2))            # exact GELU (erf)
    y = jnp.dot(f.astype(jnp.bfloat16), w2_ref[...],
                preferred_element_type=jnp.float32)
    o_ref[...] = x1 + y + bb2_ref[...]                           # second residual


def vit_block_pallas(x, params, num_heads):
    B, N, C = x.shape
    hd = C // num_heads
    scale = hd ** (-0.5)
    H = params["w1"].shape[1]                        # mlp hidden dim

    # ---- wrapper-side weight plumbing (layout only, no extra compute) ----
    wqkv = params["wqkv"]                            # (C, 3C), columns = [Q|K|V]
    # Fold the attention scale into the Q weights (literally free in-kernel),
    # then fuse per-head [Q|K|V] along the output dim -> (nh, C, 3*hd).
    wq = (wqkv[:, :C] * scale).reshape(C, num_heads, hd).transpose(1, 0, 2)
    wk = wqkv[:, C:2 * C].reshape(C, num_heads, hd).transpose(1, 0, 2)
    wv = wqkv[:, 2 * C:].reshape(C, num_heads, hd).transpose(1, 0, 2)
    wqkv_h = jnp.concatenate([wq, wk, wv], axis=-1)  # (nh, C, 3*hd)
    wproj_h = params["wproj"].reshape(num_heads, hd, C)

    bf = lambda a: a.astype(jnp.bfloat16)            # bf16 weights, f32 accumulate
    wqkv_h, wproj_h = bf(wqkv_h), bf(wproj_h)
    w1, w2 = bf(params["w1"]), bf(params["w2"])

    full = lambda shape: pl.BlockSpec(shape, lambda b: (0,) * len(shape))

    # Explicit VMEM budget: resident bf16 weights (constant index -> effectively
    # no re-fetch, still budgeted 2x for double-buffering) + activations and
    # in-kernel intermediates.  Clamped below v7x's 64 MiB physical VMEM.
    # TODO(synk): for very long sequences, add flash-style token tiling over N.
    weight_bytes = sum(int(a.size) * a.dtype.itemsize
                       for a in (wqkv_h, wproj_h, w1, w2))
    act_bytes = (4 * N * C * 4                       # x / out double-buffered (f32)
                 + num_heads * N * C * 2             # broadcast LN output (bf16)
                 + 3 * N * C * 4 + 3 * N * C * 2     # fused qkv f32 + bf16 q/k/v
                 + 2 * num_heads * N * N * 4         # scores / probs
                 + num_heads * N * C * 4             # per-head proj partials
                 + 4 * N * C * 4                     # o_h, x1, h2, residual temps
                 + 2 * N * H * 4)                    # MLP intermediate
    vmem_limit = int(min(56 << 20, max(16 << 20, 2 * weight_bytes + act_bytes)))

    return pl.pallas_call(
        _block_kernel,
        out_shape=jax.ShapeDtypeStruct((B, N, C), jnp.float32),
        grid_spec=pltpu.PrefetchScalarGridSpec(
            num_scalar_prefetch=0,
            grid=(B,),
            in_specs=[
                pl.BlockSpec((pl.Squeezed(), N, C), lambda b: (b, 0, 0)),  # x
                full((1, C)), full((1, C)),                   # norm1 gamma/beta
                full((num_heads, C, 3 * hd)),                 # fused wqkv (scale folded)
                full((num_heads, hd, C)),                     # proj weight (per head)
                full((1, C)),                                 # proj bias
                full((1, C)), full((1, C)),                   # norm2 gamma/beta
                full((C, H)), full((1, H)),                   # fc1 weight/bias
                full((H, C)), full((1, C)),                   # fc2 weight/bias
            ],
            out_specs=pl.BlockSpec((pl.Squeezed(), N, C), lambda b: (b, 0, 0)),
        ),
        compiler_params=pltpu.CompilerParams(
            dimension_semantics=("parallel",),
            vmem_limit_bytes=vmem_limit),
    )(x,
      params["g1"], params["b1"],
      wqkv_h, wproj_h, params["bproj"],
      params["g2"], params["b2"],
      w1, params["bb1"], w2, params["bb2"])


def vit_block_reference(x, params, num_heads):
    """Pure-JAX f32 reference mirroring the PyTorch module (dropouts are no-ops)."""
    B, N, C = x.shape
    hd = C // num_heads
    scale = hd ** (-0.5)

    def ln(v, g, b):
        mu = jnp.mean(v, axis=-1, keepdims=True)
        var = jnp.mean((v - mu) ** 2, axis=-1, keepdims=True)
        return (v - mu) / jnp.sqrt(var + EPS) * g + b

    h = ln(x, params["g1"], params["b1"])
    qkv = h @ params["wqkv"]                               # (B, N, 3C)
    qkv = qkv.reshape(B, N, 3, num_heads, hd).transpose(2, 0, 3, 1, 4)
    q, k, v = qkv[0], qkv[1], qkv[2]                       # (B, H, N, hd)
    attn = jnp.einsum("bhnd,bhmd->bhnm", q, k) * scale
    attn = jax.nn.softmax(attn, axis=-1)
    o = jnp.einsum("bhnm,bhmd->bhnd", attn, v)
    o = o.transpose(0, 2, 1, 3).reshape(B, N, C)
    o = o @ params["wproj"] + params["bproj"]
    x1 = x + o

    h2 = ln(x1, params["g2"], params["b2"])
    f = h2 @ params["w1"] + params["bb1"]
    f = 0.5 * f * (1.0 + jax.lax.erf(f / math.sqrt(2.0)))
    f = f @ params["w2"] + params["bb2"]
    return x1 + f


def make_params(key, dim, num_heads, mlp_ratio=4.0):
    hidden = int(dim * mlp_ratio)
    ks = jax.random.split(key, 6)
    s = 0.02
    return {
        "g1": jnp.ones((1, dim), jnp.float32),
        "b1": jnp.zeros((1, dim), jnp.float32),
        "wqkv": s * jax.random.normal(ks[0], (dim, 3 * dim), jnp.float32),
        "wproj": s * jax.random.normal(ks[1], (dim, dim), jnp.float32),
        "bproj": s * jax.random.normal(ks[2], (1, dim), jnp.float32),
        "g2": jnp.ones((1, dim), jnp.float32),
        "b2": jnp.zeros((1, dim), jnp.float32),
        "w1": s * jax.random.normal(ks[3], (dim, hidden), jnp.float32),
        "bb1": s * jax.random.normal(ks[4], (1, hidden), jnp.float32),
        "w2": s * jax.random.normal(ks[5], (hidden, dim), jnp.float32),
        "bb2": jnp.zeros((1, dim), jnp.float32),
    }


if __name__ == "__main__":
    B, N, C = 2, 8, 32
    NUM_HEADS = 4

    key = jax.random.PRNGKey(0)
    kx, kp = jax.random.split(key)
    x = jax.random.normal(kx, (B, N, C), jnp.float32)
    params = make_params(kp, C, NUM_HEADS)

    out = jax.block_until_ready(vit_block_pallas(x, params, NUM_HEADS))
    ref = vit_block_reference(x, params, NUM_HEADS)

    assert out.shape == (B, N, C)
    # bf16 matmul operands (with f32 accumulation) + approx softmax reciprocal
    # => compare against the pure-f32 reference with a bf16-appropriate tolerance.
    max_diff = float(jnp.max(jnp.abs(out - ref)))
    assert jnp.allclose(out, ref, rtol=2e-2, atol=2e-2), f"max abs diff {max_diff}"

    print("KERNEL_OK")
</pallas_src>

<mosaic_0001>
module attributes {stable_mosaic.version = 11 : i64} {
  func.func @_block_kernel(%arg0: i32, %arg1: memref<1x8x32xf32, #tpu.memory_space<vmem>>, %arg2: memref<1x32xf32, #tpu.memory_space<vmem>>, %arg3: memref<1x32xf32, #tpu.memory_space<vmem>>, %arg4: memref<4x32x24xbf16, #tpu.memory_space<vmem>>, %arg5: memref<4x8x32xbf16, #tpu.memory_space<vmem>>, %arg6: memref<1x32xf32, #tpu.memory_space<vmem>>, %arg7: memref<1x32xf32, #tpu.memory_space<vmem>>, %arg8: memref<1x32xf32, #tpu.memory_space<vmem>>, %arg9: memref<32x128xbf16, #tpu.memory_space<vmem>>, %arg10: memref<1x128xf32, #tpu.memory_space<vmem>>, %arg11: memref<128x32xbf16, #tpu.memory_space<vmem>>, %arg12: memref<1x32xf32, #tpu.memory_space<vmem>>, %arg13: memref<1x8x32xf32, #tpu.memory_space<vmem>>) attributes {dimension_semantics = [#tpu.dimension_semantics<parallel>], iteration_bounds = array<i64: 2>, scalar_prefetch = 0 : i64, scratch_operands = 0 : i64, tpu.core_type = #tpu.core_type<tc>, window_params = [{transform_indices = @transform_0, window_bounds = array<i64: 1, 8, 32>}, {pipeline_mode = #tpu.pipeline_mode<synchronous>, transform_indices = @transform_1, window_bounds = array<i64: 1, 32>}, {pipeline_mode = #tpu.pipeline_mode<synchronous>, transform_indices = @transform_2, window_bounds = array<i64: 1, 32>}, {pipeline_mode = #tpu.pipeline_mode<synchronous>, transform_indices = @transform_3, window_bounds = array<i64: 4, 32, 24>}, {pipeline_mode = #tpu.pipeline_mode<synchronous>, transform_indices = @transform_4, window_bounds = array<i64: 4, 8, 32>}, {pipeline_mode = #tpu.pipeline_mode<synchronous>, transform_indices = @transform_5, window_bounds = array<i64: 1, 32>}, {pipeline_mode = #tpu.pipeline_mode<synchronous>, transform_indices = @transform_6, window_bounds = array<i64: 1, 32>}, {pipeline_mode = #tpu.pipeline_mode<synchronous>, transform_indices = @transform_7, window_bounds = array<i64: 1, 32>}, {pipeline_mode = #tpu.pipeline_mode<synchronous>, transform_indices = @transform_8, window_bounds = array<i64: 32, 128>}, {pipeline_mode = #tpu.pipeline_mode<synchronous>, transform_indices = @transform_9, window_bounds = array<i64: 1, 128>}, {pipeline_mode = #tpu.pipeline_mode<synchronous>, transform_indices = @transform_10, window_bounds = array<i64: 128, 32>}, {pipeline_mode = #tpu.pipeline_mode<synchronous>, transform_indices = @transform_11, window_bounds = array<i64: 1, 32>}, {transform_indices = @transform_12, window_bounds = array<i64: 1, 8, 32>}]} {
    %c0 = arith.constant 0 : index
    %c0_0 = arith.constant 0 : index
    %c0_1 = arith.constant 0 : index
    %0 = vector.load %arg1[%c0, %c0_0, %c0_1] : memref<1x8x32xf32, #tpu.memory_space<vmem>>, vector<1x8x32xf32>
    %1 = vector.shape_cast %0 : vector<1x8x32xf32> to vector<8x32xf32>
    %c0_2 = arith.constant 0 : index
    %c0_3 = arith.constant 0 : index
    %2 = vector.load %arg2[%c0_2, %c0_3] : memref<1x32xf32, #tpu.memory_space<vmem>>, vector<1x32xf32>
    %c0_4 = arith.constant 0 : index
    %c0_5 = arith.constant 0 : index
    %3 = vector.load %arg3[%c0_4, %c0_5] : memref<1x32xf32, #tpu.memory_space<vmem>>, vector<1x32xf32>
    %cst = arith.constant dense<0.000000e+00> : vector<8xf32>
    %4 = vector.multi_reduction <add>, %1, %cst [1] : vector<8x32xf32> to vector<8xf32>
    %5 = vector.shape_cast %4 : vector<8xf32> to vector<8x1xf32>
    %cst_6 = arith.constant 3.200000e+01 : f32
    %6 = vector.broadcast %cst_6 : f32 to vector<8x1xf32>
    %7 = arith.divf %5, %6 : vector<8x1xf32>
    %8 = vector.broadcast %7 : vector<8x1xf32> to vector<8x32xf32>
    %9 = arith.subf %1, %8 : vector<8x32xf32>
    %10 = arith.mulf %9, %9 : vector<8x32xf32>
    %cst_7 = arith.constant dense<0.000000e+00> : vector<8xf32>
    %11 = vector.multi_reduction <add>, %10, %cst_7 [1] : vector<8x32xf32> to vector<8xf32>
    %12 = vector.shape_cast %11 : vector<8xf32> to vector<8x1xf32>
    %cst_8 = arith.constant 3.200000e+01 : f32
    %13 = vector.broadcast %cst_8 : f32 to vector<8x1xf32>
    %14 = arith.divf %12, %13 : vector<8x1xf32>
    %15 = vector.broadcast %7 : vector<8x1xf32> to vector<8x32xf32>
    %16 = arith.subf %1, %15 : vector<8x32xf32>
    %cst_9 = arith.constant 9.99999974E-6 : f32
    %17 = vector.broadcast %cst_9 : f32 to vector<8x1xf32>
    %18 = arith.addf %14, %17 : vector<8x1xf32>
    %19 = math.rsqrt %18 : vector<8x1xf32>
    %20 = vector.broadcast %19 : vector<8x1xf32> to vector<8x32xf32>
    %21 = arith.mulf %16, %20 : vector<8x32xf32>
    %22 = vector.broadcast %2 : vector<1x32xf32> to vector<8x32xf32>
    %23 = arith.mulf %21, %22 : vector<8x32xf32>
    %24 = vector.broadcast %3 : vector<1x32xf32> to vector<8x32xf32>
    %25 = arith.addf %23, %24 : vector<8x32xf32>
    %26 = arith.truncf %25 : vector<8x32xf32> to vector<8x32xbf16>
    %27 = vector.shape_cast %26 : vector<8x32xbf16> to vector<1x8x32xbf16>
    %28 = vector.broadcast %27 : vector<1x8x32xbf16> to vector<4x8x32xbf16>
    %c0_10 = arith.constant 0 : index
    %c0_11 = arith.constant 0 : index
    %c0_12 = arith.constant 0 : index
    %29 = vector.load %arg4[%c0_10, %c0_11, %c0_12] : memref<4x32x24xbf16, #tpu.memory_space<vmem>>, vector<4x32x24xbf16>
    "tpu.trace_start"() <{level = 10 : i32, message = "hnc,hce->hne"}> : () -> ()
    %cst_13 = arith.constant dense<0.000000e+00> : vector<4x8x24xf32>
    %30 = tpu.matmul %28, %29, %cst_13 {dimension_numbers = #tpu.dot_dimension_numbers<[2], [1], [1], [2], [0, 0, 0, 1, 1, 2], [0], [0]>} : vector<4x8x32xbf16>, vector<4x32x24xbf16>, vector<4x8x24xf32> -> vector<4x8x24xf32>
    "tpu.trace_stop"() : () -> ()
    %31 = vector.extract_strided_slice %30 {offsets = [0, 0, 0], sizes = [4, 8, 8], strides = [1, 1, 1]} : vector<4x8x24xf32> to vector<4x8x8xf32>
    %32 = arith.truncf %31 : vector<4x8x8xf32> to vector<4x8x8xbf16>
    %33 = vector.extract_strided_slice %30 {offsets = [0, 0, 8], sizes = [4, 8, 8], strides = [1, 1, 1]} : vector<4x8x24xf32> to vector<4x8x8xf32>
    %34 = arith.truncf %33 : vector<4x8x8xf32> to vector<4x8x8xbf16>
    %35 = vector.extract_strided_slice %30 {offsets = [0, 0, 16], sizes = [4, 8, 8], strides = [1, 1, 1]} : vector<4x8x24xf32> to vector<4x8x8xf32>
    %36 = arith.truncf %35 : vector<4x8x8xf32> to vector<4x8x8xbf16>
    "tpu.trace_start"() <{level = 10 : i32, message = "hnd,hmd->hnm"}> : () -> ()
    %cst_14 = arith.constant dense<0.000000e+00> : vector<4x8x8xf32>
    %37 = tpu.matmul %32, %34, %cst_14 {dimension_numbers = #tpu.dot_dimension_numbers<[2], [2], [1], [1], [0, 0, 0, 1, 1, 1], [0], [0]>} : vector<4x8x8xbf16>, vector<4x8x8xbf16>, vector<4x8x8xf32> -> vector<4x8x8xf32>
    "tpu.trace_stop"() : () -> ()
    %cst_15 = arith.constant dense<0xFF800000> : vector<4x8xf32>
    %38 = vector.multi_reduction <maximumf>, %37, %cst_15 [2] : vector<4x8x8xf32> to vector<4x8xf32>
    %39 = vector.shape_cast %38 : vector<4x8xf32> to vector<4x8x1xf32>
    %40 = vector.broadcast %39 : vector<4x8x1xf32> to vector<4x8x8xf32>
    %41 = arith.subf %37, %40 : vector<4x8x8xf32>
    %42 = math.exp %41 : vector<4x8x8xf32>
    %cst_16 = arith.constant dense<0.000000e+00> : vector<4x8xf32>
    %43 = vector.multi_reduction <add>, %42, %cst_16 [2] : vector<4x8x8xf32> to vector<4x8xf32>
    %44 = vector.shape_cast %43 : vector<4x8xf32> to vector<4x8x1xf32>
    %45 = tpu.reciprocal %44 {approx = true} : vector<4x8x1xf32> -> vector<4x8x1xf32>
    %46 = vector.broadcast %45 : vector<4x8x1xf32> to vector<4x8x8xf32>
    %47 = arith.mulf %42, %46 : vector<4x8x8xf32>
    %48 = arith.truncf %47 : vector<4x8x8xf32> to vector<4x8x8xbf16>
    "tpu.trace_start"() <{level = 10 : i32, message = "hnm,hmd->hnd"}> : () -> ()
    %cst_17 = arith.constant dense<0.000000e+00> : vector<4x8x8xf32>
    %49 = tpu.matmul %48, %36, %cst_17 {dimension_numbers = #tpu.dot_dimension_numbers<[2], [1], [1], [2], [0, 0, 0, 1, 1, 2], [0], [0]>} : vector<4x8x8xbf16>, vector<4x8x8xbf16>, vector<4x8x8xf32> -> vector<4x8x8xf32>
    "tpu.trace_stop"() : () -> ()
    %50 = arith.truncf %49 : vector<4x8x8xf32> to vector<4x8x8xbf16>
    %c0_18 = arith.constant 0 : index
    %c0_19 = arith.constant 0 : index
    %c0_20 = arith.constant 0 : index
    %51 = vector.load %arg5[%c0_18, %c0_19, %c0_20] : memref<4x8x32xbf16, #tpu.memory_space<vmem>>, vector<4x8x32xbf16>
    "tpu.trace_start"() <{level = 10 : i32, message = "hnd,hdc->hnc"}> : () -> ()
    %cst_21 = arith.constant dense<0.000000e+00> : vector<4x8x32xf32>
    %52 = tpu.matmul %50, %51, %cst_21 {dimension_numbers = #tpu.dot_dimension_numbers<[2], [1], [1], [2], [0, 0, 0, 1, 1, 2], [0], [0]>} : vector<4x8x8xbf16>, vector<4x8x32xbf16>, vector<4x8x32xf32> -> vector<4x8x32xf32>
    "tpu.trace_stop"() : () -> ()
    %cst_22 = arith.constant dense<0.000000e+00> : vector<8x32xf32>
    %53 = vector.multi_reduction <add>, %52, %cst_22 [0] : vector<4x8x32xf32> to vector<8x32xf32>
    %54 = arith.addf %1, %53 : vector<8x32xf32>
    %c0_23 = arith.constant 0 : index
    %c0_24 = arith.constant 0 : index
    %55 = vector.load %arg6[%c0_23, %c0_24] : memref<1x32xf32, #tpu.memory_space<vmem>>, vector<1x32xf32>
    %56 = vector.broadcast %55 : vector<1x32xf32> to vector<8x32xf32>
    %57 = arith.addf %54, %56 : vector<8x32xf32>
    %c0_25 = arith.constant 0 : index
    %c0_26 = arith.constant 0 : index
    %58 = vector.load %arg7[%c0_25, %c0_26] : memref<1x32xf32, #tpu.memory_space<vmem>>, vector<1x32xf32>
    %c0_27 = arith.constant 0 : index
    %c0_28 = arith.constant 0 : index
    %59 = vector.load %arg8[%c0_27, %c0_28] : memref<1x32xf32, #tpu.memory_space<vmem>>, vector<1x32xf32>
    %cst_29 = arith.constant dense<0.000000e+00> : vector<8xf32>
    %60 = vector.multi_reduction <add>, %57, %cst_29 [1] : vector<8x32xf32> to vector<8xf32>
    %61 = vector.shape_cast %60 : vector<8xf32> to vector<8x1xf32>
    %cst_30 = arith.constant 3.200000e+01 : f32
    %62 = vector.broadcast %cst_30 : f32 to vector<8x1xf32>
    %63 = arith.divf %61, %62 : vector<8x1xf32>
    %64 = vector.broadcast %63 : vector<8x1xf32> to vector<8x32xf32>
    %65 = arith.subf %57, %64 : vector<8x32xf32>
    %66 = arith.mulf %65, %65 : vector<8x32xf32>
    %cst_31 = arith.constant dense<0.000000e+00> : vector<8xf32>
    %67 = vector.multi_reduction <add>, %66, %cst_31 [1] : vector<8x32xf32> to vector<8xf32>
    %68 = vector.shape_cast %67 : vector<8xf32> to vector<8x1xf32>
    %cst_32 = arith.constant 3.200000e+01 : f32
    %69 = vector.broadcast %cst_32 : f32 to vector<8x1xf32>
    %70 = arith.divf %68, %69 : vector<8x1xf32>
    %71 = vector.broadcast %63 : vector<8x1xf32> to vector<8x32xf32>
    %72 = arith.subf %57, %71 : vector<8x32xf32>
    %cst_33 = arith.constant 9.99999974E-6 : f32
    %73 = vector.broadcast %cst_33 : f32 to vector<8x1xf32>
    %74 = arith.addf %70, %73 : vector<8x1xf32>
    %75 = math.rsqrt %74 : vector<8x1xf32>
    %76 = vector.broadcast %75 : vector<8x1xf32> to vector<8x32xf32>
    %77 = arith.mulf %72, %76 : vector<8x32xf32>
    %78 = vector.broadcast %58 : vector<1x32xf32> to vector<8x32xf32>
    %79 = arith.mulf %77, %78 : vector<8x32xf32>
    %80 = vector.broadcast %59 : vector<1x32xf32> to vector<8x32xf32>
    %81 = arith.addf %79, %80 : vector<8x32xf32>
    %82 = arith.truncf %81 : vector<8x32xf32> to vector<8x32xbf16>
    %c0_34 = arith.constant 0 : index
    %c0_35 = arith.constant 0 : index
    %83 = vector.load %arg9[%c0_34, %c0_35] : memref<32x128xbf16, #tpu.memory_space<vmem>>, vector<32x128xbf16>
    %cst_36 = arith.constant dense<0.000000e+00> : vector<8x128xf32>
    %84 = tpu.matmul %82, %83, %cst_36 {dimension_numbers = #tpu.dot_dimension_numbers<[1], [0], [0], [1], [0, 0, 1, 1], [], []>} : vector<8x32xbf16>, vector<32x128xbf16>, vector<8x128xf32> -> vector<8x128xf32>
    %c0_37 = arith.constant 0 : index
    %c0_38 = arith.constant 0 : index
    %85 = vector.load %arg10[%c0_37, %c0_38] : memref<1x128xf32, #tpu.memory_space<vmem>>, vector<1x128xf32>
    %86 = vector.broadcast %85 : vector<1x128xf32> to vector<8x128xf32>
    %87 = arith.addf %84, %86 : vector<8x128xf32>
    %cst_39 = arith.constant 5.000000e-01 : f32
    %88 = vector.broadcast %cst_39 : f32 to vector<8x128xf32>
    %89 = arith.mulf %88, %87 : vector<8x128xf32>
    %cst_40 = arith.constant 0.707106769 : f32
    %90 = vector.broadcast %cst_40 : f32 to vector<8x128xf32>
    %91 = arith.mulf %87, %90 : vector<8x128xf32>
    %92 = math.erf %91 : vector<8x128xf32>
    %cst_41 = arith.constant 1.000000e+00 : f32
    %93 = vector.broadcast %cst_41 : f32 to vector<8x128xf32>
    %94 = arith.addf %93, %92 : vector<8x128xf32>
    %95 = arith.mulf %89, %94 : vector<8x128xf32>
    %96 = arith.truncf %95 : vector<8x128xf32> to vector<8x128xbf16>
    %c0_42 = arith.constant 0 : index
    %c0_43 = arith.constant 0 : index
    %97 = vector.load %arg11[%c0_42, %c0_43] : memref<128x32xbf16, #tpu.memory_space<vmem>>, vector<128x32xbf16>
    %cst_44 = arith.constant dense<0.000000e+00> : vector<8x32xf32>
    %98 = tpu.matmul %96, %97, %cst_44 {dimension_numbers = #tpu.dot_dimension_numbers<[1], [0], [0], [1], [0, 0, 1, 1], [], []>} : vector<8x128xbf16>, vector<128x32xbf16>, vector<8x32xf32> -> vector<8x32xf32>
    %99 = arith.addf %57, %98 : vector<8x32xf32>
    %c0_45 = arith.constant 0 : index
    %c0_46 = arith.constant 0 : index
    %100 = vector.load %arg12[%c0_45, %c0_46] : memref<1x32xf32, #tpu.memory_space<vmem>>, vector<1x32xf32>
    %101 = vector.broadcast %100 : vector<1x32xf32> to vector<8x32xf32>
    %102 = arith.addf %99, %101 : vector<8x32xf32>
    %c0_47 = arith.constant 0 : index
    %c0_48 = arith.constant 0 : index
    %c0_49 = arith.constant 0 : index
    %103 = vector.load %arg13[%c0_47, %c0_48, %c0_49] : memref<1x8x32xf32, #tpu.memory_space<vmem>>, vector<1x8x32xf32>
    %104 = vector.shape_cast %103 : vector<1x8x32xf32> to vector<8x32xf32>
    %105 = vector.shape_cast %102 : vector<8x32xf32> to vector<1x8x32xf32>
    tpu.vector_store %arg13[%c0_47, %c0_48, %c0_49], %105 {strides = array<i32>} : memref<1x8x32xf32, #tpu.memory_space<vmem>>, vector<1x8x32xf32>,
    return
  }
  func.func @transform_0(%arg0: i32) -> (i32, i32, i32) {
    %c0_i32 = arith.constant 0 : i32
    %c0_i32_0 = arith.constant 0 : i32
    %c0_i32_1 = arith.constant 0 : i32
    return %arg0, %c0_i32, %c0_i32_0 : i32, i32, i32
  }
  func.func @transform_1(%arg0: i32) -> (i32, i32) {
    %c0_i32 = arith.constant 0 : i32
    %c0_i32_0 = arith.constant 0 : i32
    %c0_i32_1 = arith.constant 0 : i32
    return %c0_i32, %c0_i32_0 : i32, i32
  }
  func.func @transform_2(%arg0: i32) -> (i32, i32) {
    %c0_i32 = arith.constant 0 : i32
    %c0_i32_0 = arith.constant 0 : i32
    %c0_i32_1 = arith.constant 0 : i32
    return %c0_i32, %c0_i32_0 : i32, i32
  }
  func.func @transform_3(%arg0: i32) -> (i32, i32, i32) {
    %c0_i32 = arith.constant 0 : i32
    %c0_i32_0 = arith.constant 0 : i32
    %c0_i32_1 = arith.constant 0 : i32
    %c0_i32_2 = arith.constant 0 : i32
    return %c0_i32, %c0_i32_0, %c0_i32_1 : i32, i32, i32
  }
  func.func @transform_4(%arg0: i32) -> (i32, i32, i32) {
    %c0_i32 = arith.constant 0 : i32
    %c0_i32_0 = arith.constant 0 : i32
    %c0_i32_1 = arith.constant 0 : i32
    %c0_i32_2 = arith.constant 0 : i32
    return %c0_i32, %c0_i32_0, %c0_i32_1 : i32, i32, i32
  }
  func.func @transform_5(%arg0: i32) -> (i32, i32) {
    %c0_i32 = arith.constant 0 : i32
    %c0_i32_0 = arith.constant 0 : i32
    %c0_i32_1 = arith.constant 0 : i32
    return %c0_i32, %c0_i32_0 : i32, i32
  }
  func.func @transform_6(%arg0: i32) -> (i32, i32) {
    %c0_i32 = arith.constant 0 : i32
    %c0_i32_0 = arith.constant 0 : i32
    %c0_i32_1 = arith.constant 0 : i32
    return %c0_i32, %c0_i32_0 : i32, i32
  }
  func.func @transform_7(%arg0: i32) -> (i32, i32) {
    %c0_i32 = arith.constant 0 : i32
    %c0_i32_0 = arith.constant 0 : i32
    %c0_i32_1 = arith.constant 0 : i32
    return %c0_i32, %c0_i32_0 : i32, i32
  }
  func.func @transform_8(%arg0: i32) -> (i32, i32) {
    %c0_i32 = arith.constant 0 : i32
    %c0_i32_0 = arith.constant 0 : i32
    %c0_i32_1 = arith.constant 0 : i32
    return %c0_i32, %c0_i32_0 : i32, i32
  }
  func.func @transform_9(%arg0: i32) -> (i32, i32) {
    %c0_i32 = arith.constant 0 : i32
    %c0_i32_0 = arith.constant 0 : i32
    %c0_i32_1 = arith.constant 0 : i32
    return %c0_i32, %c0_i32_0 : i32, i32
  }
  func.func @transform_10(%arg0: i32) -> (i32, i32) {
    %c0_i32 = arith.constant 0 : i32
    %c0_i32_0 = arith.constant 0 : i32
    %c0_i32_1 = arith.constant 0 : i32
    return %c0_i32, %c0_i32_0 : i32, i32
  }
  func.func @transform_11(%arg0: i32) -> (i32, i32) {
    %c0_i32 = arith.constant 0 : i32
    %c0_i32_0 = arith.constant 0 : i32
    %c0_i32_1 = arith.constant 0 : i32
    return %c0_i32, %c0_i32_0 : i32, i32
  }
  func.func @transform_12(%arg0: i32) -> (i32, i32, i32) {
    %c0_i32 = arith.constant 0 : i32
    %c0_i32_0 = arith.constant 0 : i32
    %c0_i32_1 = arith.constant 0 : i32
    return %arg0, %c0_i32, %c0_i32_0 : i32, i32, i32
  }
}

</mosaic_0001>

<bundles_post_ra>
// kernel: tpu_custom_call.1
= control target key start
LH: loop header
LB: loop body
LE: loop exit
PB: predicated region body
PF: predicated region fallthrough
CT: control target
= control target key end

     0   :  { %s2391_s0 = inlined_call_operand.vmem [shape: f32[2,8,32], index: 0, kind: input, shape index: {}]   ;;  %s2392_s1 = inlined_call_operand.vmem [shape: f32[1,32], index: 1, kind: input, shape index: {}]   ;;  %s2393_s2 = inlined_call_operand.vmem [shape: f32[1,32], index: 2, kind: input, shape index: {}]   ;;  %s2394_s3 = inlined_call_operand.vmem [shape: bf16[4,32,24], index: 3, kind: input, shape index: {}]   ;;  %s2395_s4 = inlined_call_operand.vmem [shape: bf16[4,8,32], index: 4, kind: input, shape index: {}]   ;;  %s2396_s5 = inlined_call_operand.vmem [shape: f32[1,32], index: 5, kind: input, shape index: {}]   ;;  %s2397_s6 = inlined_call_operand.vmem [shape: f32[1,32], index: 6, kind: input, shape index: {}]   ;;  %s2398_s7 = inlined_call_operand.vmem [shape: f32[1,32], index: 7, kind: input, shape index: {}]   ;;  %s2399_s8 = inlined_call_operand.vmem [shape: bf16[32,128], index: 8, kind: input, shape index: {}]   ;;  %s2400_s9 = inlined_call_operand.vmem [shape: f32[1,128], index: 9, kind: input, shape index: {}]   ;;  %s2401_s10 = inlined_call_operand.vmem [shape: bf16[128,32], index: 10, kind: input, shape index: {}]   ;;  %s2402_s11 = inlined_call_operand.vmem [shape: f32[1,32], index: 11, kind: input, shape index: {}]   ;;  %s2403_s12 = inlined_call_operand.hbm [shape: f32[2,8,32], index: 12, kind: output, shape index: {}]  }
   0x1   :  { %2404 = sst [smem:[#allocation5_spill]] %s2391_s0 }
   0x2   :  { %2405 = sst [smem:[#allocation6_spill]] %s2392_s1 }
   0x3   :  { %17 = vsyncpa [#allocation3], 0 }
   0x4   :  { %19 = vsyncpa [#allocation3 + $0x1], 0  ;;  %s2058_s21 = smov 0   ;;  %s2060_s22 = smov 0  }
   0x5   :  { %s2062_s23 = smov 0   ;;  %s2064_s24 = smov 0  }
   0x6 LB: > { %s2079_s25 = sadd.s32 4294967295, %s1986_s24   ;;  %s1609_s26 = sadd.s32 4294967294, %s1986_s24   ;;  %s1986_s24 = sphi %s2064_s24, %s2413_s24   ;;  %s1982_s23 = sphi %s2062_s23, %s2412_s23   ;;  %s1978_s22 = sphi %s2060_s22, %s2411_s22   ;;  %s1974_s21 = sphi %s2058_s21, %s2410_s21  }
   0x7   : > { %s2083_s27 = sadd.s32 1, %s1986_s24   ;;  %s289_s28 = sadd.s32 1, %s1982_s23 }
   0x8   : > { %s286_s29 = ssub.s32 %s1986_s24, %s2083_s27  ;;  %p299_p0 = scmp.ne.s32.totalorder %s1982_s23, %s1978_s22 }
   0x9   : > { %p287_p1 = scmp.eq.s32.totalorder %s286_s29, 0  ;;  %p300_p2 = scmp.eq.s32.totalorder %s2079_s25, 1 }
   0xa   : > { %p305_p3 = scmp.ne.s32.totalorder %s1978_s22, %s1974_s21  ;;  %p306_p4 = scmp.eq.s32.totalorder %s1609_s26, 1 }
   0xb   : > { %s2094_s30 = scalar_select %p287_p1, %s1982_s23, %s289_s28  }
   0xc   : > { %p2096_p5 = por %p300_p2, %p299_p0  ;;  %p2100_p6 = por %p306_p4, %p305_p3 }
   0xd   : > { %p1612_p7 = scmp.ge.s32.totalorder %s1986_s24, 1  ;;  %p364_p8 = scmp.lt.s32.totalorder %s1986_s24, 3 }
   0xf   : > { %p365_p9 = pnand %p1612_p7, %p364_p8 }
  0x10   : > { %p405_p10 = scmp.lt.s32.totalorder (!%p365_p9), %s2079_s25, 1  ;;  %vm413_vm0 = vcmask (!%p365_p9), 261120   ;;  %s2408_s0 = sld [smem:[#allocation5_spill]] (!%p365_p9)  ;;  %v1884_v7 = vld [vmem:[%s2394_s3] sm:$0xff] (!%p365_p9)   ;;  %v1885_v8 = vld [vmem:[%s2394_s3 + $0x30] sm:$0xff] (!%p365_p9)   ;;  %v1988_v9 = vmov (!%p365_p9), 0.0  }
  0x11   : > { %368 = sbr.rel (%p365_p9) target bundleno = 2440 (0x988), region = 68  ;;  %1709 = vmatprep.subr.bf16.mxu0 (!%p365_p9), %v1988_v9  ;;  %1733 = vmatprep.subr.bf16.mxu1 (!%p365_p9), %v1988_v9  ;;  %v1886_v10 = vld [vmem:[%s2394_s3 + $0x8] sm:$0xff] (!%p365_p9)   ;;  %v1887_v11 = vld [vmem:[%s2394_s3 + $0x38] sm:$0xff] (!%p365_p9)   ;;  %vm1989_vm1 = vmmov (!%p365_p9), 0   ;;  %s2409_s1 = sld [smem:[#allocation6_spill]] (!%p365_p9)  ;;  %v1888_v21 = vld [vmem:[%s2394_s3 + $0x10] sm:$0xff] (!%p365_p9)  }
  0x12   : > { %1710 = vmatpush3.bf16.msra.mxu0 (!%p365_p9), %v1884_v7  ;;  %1734 = vmatpush3.bf16.msra.mxu1 (!%p365_p9), %v1885_v8  ;;  %v1616_v18 = vld [vmem:[%s2393_s2] ss:$0 sm:$0xff] (!%p365_p9)  ;;  %v1889_v23 = vld [vmem:[%s2394_s3 + $0x18] sm:$0xff] (!%p365_p9)   ;;  %v1891_v25 = vld [vmem:[%s2394_s3 + $0x28] sm:$0xff] (!%p365_p9)   ;;  %s1990_s28 = smov (!%p365_p9), 120   ;;  %vm677_vm2 = vcmask (!%p365_p9), 64512  }
  0x13   : > { %1711 = vmatprep.subr.bf16.mxu0 (!%p365_p9), %v1988_v9  ;;  %1735 = vmatprep.subr.bf16.mxu1 (!%p365_p9), %v1988_v9  ;;  %v1890_v24 = vld [vmem:[%s2394_s3 + $0x20] sm:$0xff] (!%p365_p9)   ;;  %s1991_s29 = smov (!%p365_p9), 112   ;;  %vm924_vm3 = vcmask (!%p365_p9), 1043456   ;;  %s1992_s17 = smov (!%p365_p9), [#allocation2]  }
  0x14   : > { %1713 = vmatprep.mubr.msk.bf16.mxu0 (!%p365_p9), %vm1989_vm1, %v1988_v9  ;;  %1737 = vmatprep.mubr.msk.bf16.mxu1 (!%p365_p9), %vm1989_vm1, %v1988_v9  ;;  %s1928_s18 = sshll.u32 (!%p365_p9), %s1992_s17, 4  ;;  %s1929_s18 = int_to_ptr.vmem [resolvable:$false] %s1928_s18 }
  0x16   : > { %1712 = vmatpush3.bf16.msra.mxu0 (!%p365_p9), %v1886_v10  ;;  %1736 = vmatpush3.bf16.msra.mxu1 (!%p365_p9), %v1887_v11 }
  0x17   : > { %1717 = vmatprep.subr.bf16.mxu0 (!%p365_p9), %v1988_v9  ;;  %1747 = vmatprep.subr.bf16.mxu1 (!%p365_p9), %v1988_v9  ;;  %v1615_v16 = vld [vmem:[%s2409_s1] ss:$0 sm:$0xff] (!%p365_p9)  ;;  %s1930_s1 = scalar_lea.vmem (!%p365_p9), %s1929_s18, 256 }
  0x18   : > { %s406_s15 = scalar_select %p405_p10, %s2079_s25, 1 }
  0x1a   : > { %s1614_s16 = sshll.u32 %s406_s15, 3  ;;  %s402_s15 = sand.u32 1, %s1978_s22  }
  0x1b   : > { %s408_s19 = scalar_lea.vmem %s2408_s0, %s1614_s16  ;;  %s1613_s16 = sshll.u32 %s402_s15, 3 }
  0x1c   : > { %v2111_v0 = vld [vmem:[%s408_s19] sm:$0xff]  ;;  %s1658_s19 = sshll.u32 %s2079_s25, 7  ;;  %s404_s20 = scalar_lea.vmem [#allocation2], %s1613_s16 }
  0x1d   : > { %v414_v1 = vsel %vm413_vm0, %v2111_v0, 0.0  ;;  %s1550_s26 = sshll.u32 %s404_s20, 4  ;;  %s2348_s0 = scalar_lea.hbm %s2403_s12, %s1658_s19  ;;  %s2350_s26 = int_to_ptr.vmem [resolvable:$true] %s1550_s26 }
  0x1e   : > { %415 = vadd.xlane.f32.xlu0 %v414_v1  ;;  %s1537_s25 = scalar_lea.sflag [#allocation3], %s402_s15  ;;  %s1924_s16 = scalar_lea.vmem %s2350_s26, 128 }
  0x1f   : > { %p1925_p11 = scmp.ne.s32.totalorder %s2350_s26, %s1924_s16  ;;  %p1931_p0 = scmp.lt.s32.totalorder %s2350_s26, %s1929_s18 }
  0x20   : > { %p1932_p1 = scmp.lt.s32.totalorder %s1930_s1, %s1924_s16 }
  0x21   : > { %p1926_p12 = pnand %p1925_p11, %p2096_p5 }
  0x22   : > { %p1933_p2 = por %p1932_p1, %p1931_p0 }
  0x23   : > { %p1927_p13 = pneg %p1926_p12 }
  0x25   : > { %p1934_p3 = pnand %p1933_p2, %p1927_p13 }
  0xab   : > { %v416_v2 = vpop.xlane.xlu0 %415 }
  0xac   : > { %v418_v3 = vmul.f32 0.03125, %v416_v2 }
  0xae   : > { %v419_v4 = vsub.f32 %v2111_v0, %v418_v3 }
  0xb0   : > { %v420_v5 = vmul.f32 %v419_v4, %v419_v4 }
  0xb2   : > { %v421_v6 = vsel %vm413_vm0, %v420_v5, 0.0 }
  0xb3   : > { %422 = vadd.xlane.f32.xlu0 %v421_v6 }
 0x140   : > { %v423_v12 = vpop.xlane.xlu0 %422 }
 0x141   : > { %v424_v13 = vmul.f32 0.03125, %v423_v12 }
 0x143   : > { %v425_v14 = vadd.f32 1e-05, %v424_v13 }
 0x145   : > { %1902 = vrsqrt.f32 %v425_v14 }
 0x14f   : > { %v1903_v15 = vpop.eup %1902 }
 0x150   : > { %v427_v17 = vmul.f32 %v1903_v15, %v419_v4 }
 0x152   : > { %v434_v19 = vmul.f32 %v1615_v16, %v427_v17 }
 0x154   : > { %v441_v20 = vadd.f32 %v1616_v18, %v434_v19 }
 0x156   : > { %v442_v22 = vpack.c.bf16 %v441_v20, %v441_v20 }
 0x158   : > { %1714 = vmatmul.mubr.msk.bf16.vlgmr.msra.gmra.mrb[0].mxu0 %vm413_vm0, %v442_v22  ;;  %1738 = vmatmul.mubr.msk.bf16.vlgmr.msra.gmra.mrb[0].mxu1 %vm413_vm0, %v442_v22 }
 0x159   : > { %1718 = vmatpush3.bf16.msra.mxu0 %v1888_v21  ;;  %1721 = vmatprep.mubr.msk.bf16.mxu0 %vm1989_vm1, %v1988_v9 }
 0x15a   : > { %1719 = vmatprep.subr.bf16.mxu0 %v1988_v9  ;;  %1749 = vmatprep.mubr.msk.bf16.mxu1 %vm1989_vm1, %v1988_v9 }
 0x15d   : > { %1720 = vmatpush3.bf16.msra.mxu0 %v1889_v23 }
 0x15e   : > { %1725 = vmatprep.subr.bf16.mxu0 %v1988_v9 }
 0x160   : > { %1722 = vmatmul.mubr.msk.bf16.vlgmr.msra.gmra.mrb[4].mxu0 %vm413_vm0, %v442_v22 }
 0x161   : > { %1726 = vmatpush3.bf16.msra.mxu0 %v1890_v24  ;;  %1729 = vmatprep.mubr.msk.bf16.mxu0 %vm1989_vm1, %v1988_v9 }
 0x162   : > { %1727 = vmatprep.subr.bf16.mxu0 %v1988_v9 }
 0x165   : > { %1728 = vmatpush3.bf16.msra.mxu0 %v1891_v25 }
 0x166   : > { %1741 = vmatprep.subr.bf16.mxu0 %v1988_v9 }
 0x168   : > { %1730 = vmatmul.mubr.msk.bf16.vlgmr.msra.gmra.mrb[8].mxu0 %vm413_vm0, %v442_v22 }
 0x169   : > { %1743 = vmatprep.mubr.msk.bf16.mxu0 %vm1989_vm1, %v1988_v9 }
 0x22b   : > { %v508_v26 = vpop.f32.mrb[0].mxu0  ;;  %v664_v27 = vpop.f32.mrb[0].mxu1 }
 0x22c   : > { %v2173_v28 = vpack.c.bf16 %v508_v26, %v508_v26  ;;  %v1715_v29 = vpop.f32.mrb[1].mxu0  ;;  %v1739_v30 = vpop.f32.mrb[1].mxu1  ;;  %v2179_v40 = vpack.c.bf16 %v664_v27, %v664_v27 }
 0x22d   : > { %v511_v31 = vpop.f32.mrb[2].mxu0  ;;  %v667_v32 = vpop.f32.mrb[2].mxu1 }
 0x22e   : > { %v1740_v33 = vpop.f32.mrb[3].mxu1  ;;  %675 = vrot.lane.b32.xlu1 %v2173_v28, %s1990_s28  ;;  %v1716_v34 = vpop.f32.mrb[3].mxu0 }
 0x233   : > { %v560_v35 = vpop.f32.mrb[4].mxu0 }
 0x234   : > { %v2176_v36 = vpack.c.bf16 %v560_v35, %v560_v35  ;;  %v1723_v37 = vpop.f32.mrb[5].mxu0 }
 0x235   : > { %v563_v38 = vpop.f32.mrb[6].mxu0 }
 0x236   : > { %725 = vrot.lane.b32.xlu1 %v2176_v36, %s1990_s28  ;;  %v1724_v39 = vpop.f32.mrb[7].mxu0 }
 0x23a   : > { %823 = vrot.lane.b32.xlu1 %v2179_v40, %s1990_s28 }
 0x23b   : > { %v612_v41 = vpop.f32.mrb[8].mxu0 }
 0x23c   : > { %v2182_v42 = vpack.c.bf16 %v612_v41, %v612_v41  ;;  %v1731_v43 = vpop.f32.mrb[9].mxu0 }
 0x23d   : > { %v615_v44 = vpop.f32.mrb[10].mxu0 }
 0x23e   : > { %774 = vrot.lane.b32.xlu0 %v2182_v42, %s1990_s28  ;;  %v1732_v45 = vpop.f32.mrb[11].mxu0 }
 0x2a0   : > { %v676_v46 = vpop.permute.xlu1 %675 }
 0x2a1   : > { %v682_v47 = vsel %vm677_vm2, %v676_v46, 0 }
 0x2a2   : > { %1742 = vmatpush3.bf16.xpose.msra.mxu0 %v682_v47 }
 0x2a3   : > { %1753 = vmatprep.subr.bf16.mxu0 %v1988_v9 }
 0x2a8   : > { %v726_v48 = vpop.permute.xlu1 %725 }
 0x2a9   : > { %v731_v49 = vsel %vm677_vm2, %v726_v48, 0  ;;  %1744 = vmatmul.mubr.msk.bf16.vlgmr.msra.gmra.mrb[12].mxu0 %vm677_vm2, %v2173_v28 }
 0x2aa   : > { %1748 = vmatpush3.bf16.xpose.msra.mxu1 %v731_v49  ;;  %1755 = vmatprep.mubr.msk.bf16.mxu0 %vm1989_vm1, %v1988_v9 }
 0x2ab   : > { %1759 = vmatprep.subr.bf16.mxu1 %v1988_v9 }
 0x2ac   : > { %v824_v50 = vpop.permute.xlu1 %823 }
 0x2ad   : > { %v829_v52 = vsel %vm677_vm2, %v824_v50, 0 }
 0x2b0   : > { %v775_v51 = vpop.permute.xlu0 %774 }
 0x2b1   : > { %v780_v53 = vsel %vm677_vm2, %v775_v51, 0  ;;  %1750 = vmatmul.mubr.msk.bf16.vlgmr.msra.gmra.mrb[4].mxu1 %vm677_vm2, %v2176_v36 }
 0x2b2   : > { %1754 = vmatpush3.bf16.xpose.msra.mxu0 %v780_v53  ;;  %1760 = vmatpush3.bf16.xpose.msra.mxu1 %v829_v52 }
 0x2b3   : > { %1761 = vmatprep.mubr.msk.bf16.mxu1 %vm1989_vm1, %v1988_v9  ;;  %1765 = vmatprep.subr.bf16.mxu0 %v1988_v9 }
 0x2b4   : > { %1771 = vmatprep.subr.bf16.mxu1 %v1988_v9 }
 0x2b9   : > { %1756 = vmatmul.mubr.msk.bf16.vlgmr.msra.gmra.mrb[16].mxu0 %vm677_vm2, %v2182_v42  ;;  %1762 = vmatmul.mubr.msk.bf16.vlgmr.msra.gmra.mrb[8].mxu1 %vm677_vm2, %v2179_v40 }
 0x2ba   : > { %1767 = vmatprep.mubr.msk.bf16.mxu0 %vm1989_vm1, %v1988_v9  ;;  %1773 = vmatprep.mubr.msk.bf16.mxu1 %vm1989_vm1, %v1988_v9 }
 0x37c   : > { %v718_v54 = vpop.f32.mrb[12].mxu0 }
 0x37d   : > { %v1745_v55 = vpop.f32.mrb[13].mxu0  ;;  %v871_v56 = vsel %vm677_vm2, %v718_v54, -inf }
 0x37e   : > { %872 = vmax.xlane.f32.xlu1 %v871_v56  ;;  %v721_v57 = vpop.f32.mrb[14].mxu0  ;;  %v1116_v56 = vld [vmem:[%s2395_s4] sm:$0xf] }
 0x37f   : > { %v1746_v58 = vpop.f32.mrb[15].mxu0  ;;  %v1124_v57 = vsel %vm924_vm3, %v1116_v56, 0  ;;  %v1895_v56 = vld [vmem:[%s2401_s10 + $0x8] sm:$0xff]  }
 0x380   : > { %v1117_v58 = vld [vmem:[%s2395_s4 + $0x4] sm:$0xf] }
 0x384   : > { %v767_v59 = vpop.f32.mrb[4].mxu1 }
 0x385   : > { %v1751_v60 = vpop.f32.mrb[5].mxu1  ;;  %v874_v61 = vsel %vm677_vm2, %v767_v59, -inf }
 0x386   : > { %v770_v62 = vpop.f32.mrb[6].mxu1  ;;  %875 = vmax.xlane.f32.xlu0 %v874_v61  ;;  %v1118_v60 = vld [vmem:[%s2395_s4 + $0x8] sm:$0xf] }
 0x387   : > { %v1752_v63 = vpop.f32.mrb[7].mxu1 }
 0x38c   : > { %v816_v1 = vpop.f32.mrb[16].mxu0  ;;  %v865_v2 = vpop.f32.mrb[8].mxu1 }
 0x38d   : > { %v1757_v3 = vpop.f32.mrb[17].mxu0  ;;  %v1763_v4 = vpop.f32.mrb[9].mxu1  ;;  %v877_v5 = vsel %vm677_vm2, %v816_v1, -inf  ;;  %v880_v11 = vsel %vm677_vm2, %v865_v2, -inf }
 0x38e   : > { %v868_v6 = vpop.f32.mrb[10].mxu1  ;;  %878 = vmax.xlane.f32.xlu1 %v877_v5  ;;  %v819_v7 = vpop.f32.mrb[18].mxu0  ;;  %v1119_v4 = vld [vmem:[%s2395_s4 + $0xc] sm:$0xf] }
 0x38f   : > { %v1758_v8 = vpop.f32.mrb[19].mxu0  ;;  %v1764_v10 = vpop.f32.mrb[11].mxu1 }
 0x390   : > { %v1262_v8 = vsel %vm924_vm3, %v1119_v4, 0 }
 0x392   : > { %881 = vmax.xlane.f32.xlu1 %v880_v11 }
 0x39c   : > { %919 = vrot.lane.b32.xlu0 %v2173_v28, %s1991_s29 }
 0x3a3   : > { %968 = vrot.lane.b32.xlu1 %v2176_v36, %s1991_s29 }
 0x40b   : > { %v873_v12 = vpop.xlane.xlu1 %872 }
 0x40c   : > { %v883_v13 = vsub.f32 %v718_v54, %v873_v12 }
 0x40e   : > { %v887_v14 = vmul.f32 1.442695, %v883_v13 }
 0x410   : > { %1904 = vpow2.f32 %v887_v14 }
 0x413   : > { %v876_v15 = vpop.xlane.xlu0 %875 }
 0x414   : > { %v884_v16 = vsub.f32 %v767_v59, %v876_v15  ;;  %v1170_v59 = vsel %vm924_vm3, %v1117_v58, 0 }
 0x416   : > { %v889_v17 = vmul.f32 1.442695, %v884_v16 }
 0x417   : > { %v920_v18 = vpop.permute.xlu0 %919 }
 0x418   : > { %1906 = vpow2.f32 %v889_v17  ;;  %v926_v19 = vsel %vm924_vm3, %v920_v18, 0 }
 0x419   : > { %1766 = vmatpush3.bf16.msra.mxu0 %v926_v19 }
 0x41a   : > { %v1905_v20 = vpop.eup %1904  ;;  %1777 = vmatprep.subr.bf16.mxu0 %v1988_v9 }
 0x41b   : > { %v879_v21 = vpop.xlane.xlu1 %878  ;;  %v895_v22 = vsel %vm677_vm2, %v1905_v20, 0.0 }
 0x41c   : > { %v885_v23 = vsub.f32 %v816_v1, %v879_v21  ;;  %896 = vadd.xlane.f32.xlu1 %v895_v22  ;;  %v1216_v1 = vsel %vm924_vm3, %v1118_v60, 0 }
 0x41e   : > { %v891_v24 = vmul.f32 1.442695, %v885_v23 }
 0x41f   : > { %v882_v25 = vpop.xlane.xlu1 %881 }
 0x420   : > { %1908 = vpow2.f32 %v891_v24  ;;  %v886_v26 = vsub.f32 %v865_v2, %v882_v25 }
 0x422   : > { %v1907_v27 = vpop.eup %1906  ;;  %v893_v28 = vmul.f32 1.442695, %v886_v26 }
 0x423   : > { %v969_v29 = vpop.permute.xlu1 %968  ;;  %v898_v30 = vsel %vm677_vm2, %v1907_v27, 0.0 }
 0x424   : > { %1910 = vpow2.f32 %v893_v28  ;;  %v974_v31 = vsel %vm924_vm3, %v969_v29, 0  ;;  %899 = vadd.xlane.f32.xlu1 %v898_v30 }
 0x425   : > { %1772 = vmatpush3.bf16.msra.mxu1 %v974_v31 }
 0x426   : > { %1783 = vmatprep.subr.bf16.mxu1 %v1988_v9 }
 0x42a   : > { %v1909_v32 = vpop.eup %1908 }
 0x42b   : > { %v901_v33 = vsel %vm677_vm2, %v1909_v32, 0.0 }
 0x42c   : > { %902 = vadd.xlane.f32.xlu0 %v901_v33 }
 0x42e   : > { %v1911_v34 = vpop.eup %1910 }
 0x42f   : > { %v904_v35 = vsel %vm677_vm2, %v1911_v34, 0.0 }
 0x430   : > { %905 = vadd.xlane.f32.xlu1 %v904_v35 }
 0x441   : > { %1016 = vrot.lane.b32.xlu1 %v2182_v42, %s1991_s29 }
 0x442   : > { %1064 = vrot.lane.b32.xlu0 %v2179_v40, %s1991_s29 }
 0x4a9   : > { %v897_v36 = vpop.xlane.xlu1 %896 }
 0x4aa   : > { %1912 = vrcp.f32 %v897_v36 }
 0x4b1   : > { %v900_v37 = vpop.xlane.xlu1 %899 }
 0x4b2   : > { %1914 = vrcp.f32 %v900_v37 }
 0x4b4   : > { %v1913_v38 = vpop.eup %1912 }
 0x4b5   : > { %v911_v39 = vmul.f32 %v1913_v38, %v1905_v20 }
 0x4b7   : > { %v915_v41 = vpack.c.bf16 %v911_v39, %v911_v39 }
 0x4b9   : > { %v903_v43 = vpop.xlane.xlu0 %902  ;;  %1768 = vmatmul.mubr.msk.bf16.vlgmr.msra.gmra.mrb[20].mxu0 %vm677_vm2, %v915_v41 }
 0x4ba   : > { %1916 = vrcp.f32 %v903_v43  ;;  %1779 = vmatprep.mubr.msk.bf16.mxu0 %vm1989_vm1, %v1988_v9 }
 0x4bc   : > { %v1915_v44 = vpop.eup %1914 }
 0x4bd   : > { %v912_v45 = vmul.f32 %v1915_v44, %v1907_v27  ;;  %v906_v42 = vpop.xlane.xlu1 %905  ;;  %v1065_v46 = vpop.permute.xlu0 %1064 }
 0x4be   : > { %1918 = vrcp.f32 %v906_v42  ;;  %v1070_v47 = vsel %vm924_vm3, %v1065_v46, 0  ;;  %v1641_v46 = vld [vmem:[%s2396_s5] ss:$0 sm:$0xff] }
 0x4bf   : > { %v916_v40 = vpack.c.bf16 %v912_v45, %v912_v45 }
 0x4c1   : > { %1774 = vmatmul.mubr.msk.bf16.vlgmr.msra.gmra.mrb[12].mxu1 %vm677_vm2, %v916_v40  ;;  %v1017_v48 = vpop.permute.xlu1 %1016 }
 0x4c2   : > { %1784 = vmatpush3.bf16.msra.mxu1 %v1070_v47  ;;  %v1022_v49 = vsel %vm924_vm3, %v1017_v48, 0  ;;  %1785 = vmatprep.mubr.msk.bf16.mxu1 %vm1989_vm1, %v1988_v9 }
 0x4c3   : > { %1778 = vmatpush3.bf16.msra.mxu0 %v1022_v49  ;;  %1795 = vmatprep.subr.bf16.mxu1 %v1988_v9 }
 0x4c4   : > { %v1917_v50 = vpop.eup %1916  ;;  %1789 = vmatprep.subr.bf16.mxu0 %v1988_v9 }
 0x4c5   : > { %v913_v51 = vmul.f32 %v1917_v50, %v1909_v32 }
 0x4c7   : > { %v917_v52 = vpack.c.bf16 %v913_v51, %v913_v51 }
 0x4c8   : > { %v1919_v53 = vpop.eup %1918 }
 0x4c9   : > { %v914_v54 = vmul.f32 %v1919_v53, %v1911_v34  ;;  %1780 = vmatmul.mubr.msk.bf16.vlgmr.msra.gmra.mrb[24].mxu0 %vm677_vm2, %v917_v52 }
 0x4ca   : > { %1791 = vmatprep.mubr.msk.bf16.mxu0 %vm1989_vm1, %v1988_v9  ;;  %1790 = vmatpush3.bf16.msra.mxu0 %v1124_v57  ;;  %v1896_v57 = vld [vmem:[%s2401_s10 + $0x10] sm:$0xff]  }
 0x4cb   : > { %v918_v55 = vpack.c.bf16 %v914_v54, %v914_v54  ;;  %1801 = vmatprep.subr.bf16.mxu0 %v1988_v9  ;;  %v1892_v54 = vld [vmem:[%s2399_s8] sm:$0xff]  }
 0x4cd   : > { %1786 = vmatmul.mubr.msk.bf16.vlgmr.msra.gmra.mrb[16].mxu1 %vm677_vm2, %v918_v55  ;;  %v1894_v55 = vld [vmem:[%s2401_s10] sm:$0xff]  }
 0x4ce   : > { %1797 = vmatprep.mubr.msk.bf16.mxu1 %vm1989_vm1, %v1988_v9  ;;  %1796 = vmatpush3.bf16.msra.mxu1 %v1170_v59 }
 0x4cf   : > { %1807 = vmatprep.subr.bf16.mxu1 %v1988_v9 }
 0x58c   : > { %v962_v61 = vpop.f32.mrb[20].mxu0 }
 0x58d   : > { %v1112_v62 = vpack.c.bf16 %v962_v61, %v962_v61  ;;  %v1769_v63 = vpop.f32.mrb[21].mxu0 }
 0x58e   : > { %v965_v2 = vpop.f32.mrb[22].mxu0 }
 0x58f   : > { %v1770_v3 = vpop.f32.mrb[23].mxu0  ;;  %1792 = vmatmul.mubr.msk.bf16.vlgmr.msra.gmra.mrb[28].mxu0 %vm677_vm2, %v1112_v62  ;;  %v1642_v62 = vld [vmem:[%s2397_s6] ss:$0 sm:$0xff] }
 0x590   : > { %1802 = vmatpush3.bf16.msra.mxu0 %v1216_v1  ;;  %1803 = vmatprep.mubr.msk.bf16.mxu0 %vm1989_vm1, %v1988_v9  ;;  %v1643_v1 = vld [vmem:[%s2398_s7] ss:$0 sm:$0xff] }
 0x591   : > { %1813 = vmatprep.subr.bf16.mxu0 %v1988_v9 }
 0x594   : > { %v1010_v5 = vpop.f32.mrb[12].mxu1 }
 0x595   : > { %v1113_v6 = vpack.c.bf16 %v1010_v5, %v1010_v5  ;;  %v1775_v7 = vpop.f32.mrb[13].mxu1  ;;  %v1897_v5 = vld [vmem:[%s2401_s10 + $0x18] sm:$0xff]  }
 0x596   : > { %v1013_v10 = vpop.f32.mrb[14].mxu1  ;;  %v1899_v7 = vld [vmem:[%s2401_s10 + $0x28] sm:$0xff]  }
 0x597   : > { %v1776_v11 = vpop.f32.mrb[15].mxu1  ;;  %1798 = vmatmul.mubr.msk.bf16.vlgmr.msra.gmra.mrb[20].mxu1 %vm677_vm2, %v1113_v6  ;;  %v1898_v6 = vld [vmem:[%s2401_s10 + $0x20] sm:$0xff]   ;;  %v1901_v10 = vld [vmem:[%s2401_s10 + $0x38] sm:$0xff]  }
 0x598   : > { %1808 = vmatpush3.bf16.msra.mxu1 %v1262_v8  ;;  %1809 = vmatprep.mubr.msk.bf16.mxu1 %vm1989_vm1, %v1988_v9  ;;  %v1900_v8 = vld [vmem:[%s2401_s10 + $0x30] sm:$0xff]   ;;  %v1644_v11 = vld [vmem:[%s2400_s9] ss:$0 sm:$0xff] }
 0x599   : > { %1821 = vmatprep.subr.bf16.mxu1 %v1988_v9 }
 0x59c   : > { %v1058_v12 = vpop.f32.mrb[24].mxu0 }
 0x59d   : > { %v1114_v13 = vpack.c.bf16 %v1058_v12, %v1058_v12  ;;  %v1781_v14 = vpop.f32.mrb[25].mxu0 }
 0x59e   : > { %v1061_v15 = vpop.f32.mrb[26].mxu0 }
 0x59f   : > { %v1782_v16 = vpop.f32.mrb[27].mxu0  ;;  %1804 = vmatmul.mubr.msk.bf16.vlgmr.msra.gmra.mrb[32].mxu0 %vm677_vm2, %v1114_v13 }
 0x5a0   : > { %v1106_v17 = vpop.f32.mrb[16].mxu1  ;;  %1817 = vmatprep.mubr.msk.bf16.mxu0 %vm1989_vm1, %v1988_v9  ;;  %1814 = vmatpush3.bf16.msra.mxu0 %v1892_v54 }
 0x5a1   : > { %v1115_v18 = vpack.c.bf16 %v1106_v17, %v1106_v17  ;;  %v1787_v19 = vpop.f32.mrb[17].mxu1  ;;  %1815 = vmatprep.subr.bf16.mxu0 %v1988_v9 }
 0x5a2   : > { %v1109_v20 = vpop.f32.mrb[18].mxu1 }
 0x5a3   : > { %v1788_v21 = vpop.f32.mrb[19].mxu1  ;;  %1810 = vmatmul.mubr.msk.bf16.vlgmr.msra.gmra.mrb[24].mxu1 %vm677_vm2, %v1115_v18 }
 0x5a4   : > { %1837 = vmatprep.mubr.msk.bf16.mxu1 %vm1989_vm1, %v1988_v9  ;;  %1822 = vmatpush3.bf16.msra.mxu1 %v1894_v55 }
 0x5a5   : > { %1823 = vmatprep.subr.bf16.mxu1 %v1988_v9 }
 0x5a8   : > { %1824 = vmatpush3.bf16.msra.mxu1 %v1895_v56 }
 0x5a9   : > { %1825 = vmatprep.subr.bf16.mxu1 %v1988_v9 }
 0x5ac   : > { %1826 = vmatpush3.bf16.msra.mxu1 %v1896_v57 }
 0x5ad   : > { %1827 = vmatprep.subr.bf16.mxu1 %v1988_v9 }
 0x5b0   : > { %1828 = vmatpush3.bf16.msra.mxu1 %v1897_v5 }
 0x5b1   : > { %1829 = vmatprep.subr.bf16.mxu1 %v1988_v9 }
 0x5b4   : > { %1830 = vmatpush3.bf16.msra.mxu1 %v1898_v6 }
 0x5b5   : > { %1831 = vmatprep.subr.bf16.mxu1 %v1988_v9 }
 0x5b8   : > { %1832 = vmatpush3.bf16.msra.mxu1 %v1899_v7 }
 0x5b9   : > { %1833 = vmatprep.subr.bf16.mxu1 %v1988_v9 }
 0x5bc   : > { %1834 = vmatpush3.bf16.msra.mxu1 %v1900_v8 }
 0x5bd   : > { %1835 = vmatprep.subr.bf16.mxu1 %v1988_v9 }
 0x5c0   : > { %1836 = vmatpush3.bf16.msra.mxu1 %v1901_v10 }
 0x662   : > { %v1160_v22 = vpop.f32.mrb[28].mxu0 }
 0x663   : > { %v1793_v23 = vpop.f32.mrb[29].mxu0  ;;  %v1304_v27 = vsel %vm413_vm0, %v1160_v22, 0.0 }
 0x664   : > { %v1163_v24 = vpop.f32.mrb[30].mxu0  ;;  %v1656_v23 = vld [vmem:[%s2402_s11] ss:$0 sm:$0xff] }
 0x665   : > { %v1794_v25 = vpop.f32.mrb[31].mxu0 }
 0x66a   : > { %v1206_v26 = vpop.f32.mrb[20].mxu1 }
 0x66b   : > { %v1305_v28 = vsel %vm413_vm0, %v1206_v26, 0.0  ;;  %v1799_v29 = vpop.f32.mrb[21].mxu1 }
 0x66c   : > { %v1306_v30 = vadd.f32 %v1305_v28, %v1304_v27  ;;  %v1209_v31 = vpop.f32.mrb[22].mxu1 }
 0x66d   : > { %v1800_v32 = vpop.f32.mrb[23].mxu1 }
 0x672   : > { %v1252_v33 = vpop.f32.mrb[32].mxu0 }
 0x673   : > { %v1307_v34 = vsel %vm413_vm0, %v1252_v33, 0.0  ;;  %v1805_v35 = vpop.f32.mrb[33].mxu0 }
 0x674   : > { %v1308_v36 = vadd.f32 %v1307_v34, %v1306_v30  ;;  %v1255_v37 = vpop.f32.mrb[34].mxu0 }
 0x675   : > { %v1806_v38 = vpop.f32.mrb[35].mxu0 }
 0x676   : > { %v1298_v39 = vpop.f32.mrb[24].mxu1 }
 0x677   : > { %v1309_v41 = vsel %vm413_vm0, %v1298_v39, 0.0  ;;  %v1811_v43 = vpop.f32.mrb[25].mxu1 }
 0x678   : > { %v1310_v44 = vadd.f32 %v1309_v41, %v1308_v36  ;;  %v1301_v45 = vpop.f32.mrb[26].mxu1 }
 0x679   : > { %v1812_v42 = vpop.f32.mrb[27].mxu1 }
 0x67a   : > { %v1311_v40 = vadd.f32 %v1310_v44, %v2111_v0  ;;  %v1893_v0 = vld [vmem:[%s2399_s8 + $0x8] sm:$0xff]  }
 0x67b   : > { %1816 = vmatpush3.bf16.msra.mxu0 %v1893_v0 }
 0x67c   : > { %v2285_v47 = vadd.f32 %v1641_v46, %v1311_v40 }
 0x67e   : > { %v1322_v48 = vsel %vm413_vm0, %v2285_v47, 0.0 }
 0x67f   : > { %1323 = vadd.xlane.f32.xlu1 %v1322_v48 }
 0x70c   : > { %v1324_v49 = vpop.xlane.xlu1 %1323 }
 0x70d   : > { %v1325_v50 = vmul.f32 0.03125, %v1324_v49 }
 0x70f   : > { %v1326_v51 = vsub.f32 %v2285_v47, %v1325_v50 }
 0x711   : > { %v1327_v52 = vmul.f32 %v1326_v51, %v1326_v51 }
 0x713   : > { %v1328_v53 = vsel %vm413_vm0, %v1327_v52, 0.0 }
 0x714   : > { %1329 = vadd.xlane.f32.xlu0 %v1328_v53 }
 0x7a1   : > { %v1330_v58 = vpop.xlane.xlu0 %1329 }
 0x7a2   : > { %v1331_v59 = vmul.f32 0.03125, %v1330_v58 }
 0x7a4   : > { %v1332_v60 = vadd.f32 1e-05, %v1331_v59 }
 0x7a6   : > { %1920 = vrsqrt.f32 %v1332_v60 }
 0x7b0   : > { %v1921_v61 = vpop.eup %1920 }
 0x7b1   : > { %v1334_v63 = vmul.f32 %v1921_v61, %v1326_v51 }
 0x7b3   : > { %v1341_v2 = vmul.f32 %v1642_v62, %v1334_v63 }
 0x7b5   : > { %v1348_v3 = vadd.f32 %v1643_v1, %v1341_v2 }
 0x7b7   : > { %v1349_v4 = vpack.c.bf16 %v1348_v3, %v1348_v3 }
 0x7b9   : > { %1818 = vmatmul.mubr.msk.bf16.vlgmr.msra.gmra.mrb[36].mxu0 %vm413_vm0, %v1349_v4 }
 0x88c   : > { %v1410_v12 = vpop.f32.mrb[36].mxu0 }
 0x88d   : > { %v1411_v13 = vadd.f32 %v1644_v11, %v1410_v12  ;;  %v1819_v14 = vpop.f32.mrb[37].mxu0 }
 0x88e   : > { %v1413_v15 = vpop.f32.mrb[38].mxu0 }
 0x88f   : > { %v1417_v16 = vmul.f32 0.70710677, %v1411_v13  ;;  %v1820_v17 = vpop.f32.mrb[39].mxu0  ;;  %v1416_v9 = vmul.f32 0.5, %v1411_v13 }
 0x891   : > { %1922 = verf.f32 %v1417_v16 }
 0x89b   : > { %v1923_v18 = vpop.eup %1922 }
 0x89c   : > { %v1419_v19 = vadd.f32 1.0, %v1923_v18 }
 0x89e   : > { %v1420_v20 = vmul.f32 %v1419_v19, %v1416_v9 }
 0x8a0   : > { %v1421_v21 = vpack.c.bf16 %v1420_v20, %v1420_v20 }
 0x8a2   : > { %1838 = vmatmul.mubr.bf16.vlgmr.msra.gmra.mrb[28].mxu1 %v1421_v21 }
 0x975   : > { %v1520_v22 = vpop.f32.mrb[28].mxu1 }
 0x976   : > { %v1526_v24 = vadd.f32 %v1520_v22, %v2285_v47  ;;  %v1839_v25 = vpop.f32.mrb[29].mxu1 }
 0x977   : > { %v1523_v26 = vpop.f32.mrb[30].mxu1 }
 0x978   : > { %v1534_v27 = vadd.f32 %v1656_v23, %v1526_v24  ;;  %v1840_v28 = vpop.f32.mrb[31].mxu1 }
 0x97a   : > { %1535 = vst.msk [vmem:[%s404_s20] sm:$0xff] %vm413_vm0, %v1534_v27 }
 0x97b   : > { %1937 = shalt.err (!%p1934_p3)
}
 0x97c   : > { %s1938_s15 = scalar_lea.hbm %s2348_s0, 128  ;;  %s1942_s28 = scalar_lea.hbm %s2403_s12, 256 }
 0x97d   : > { %p1939_p4 = scmp.ne.s32.totalorder %s2348_s0, %s1938_s15  ;;  %p1943_p9 = scmp.lt.u32.totalorder %s2348_s0, %s2403_s12 }
 0x97e   : > { %p1944_p10 = scmp.lt.u32.totalorder %s1942_s28, %s1938_s15  ;;  %p1946_p12 = scmp.lt.u32.totalorder %s1938_s15, %s2348_s0 }
 0x97f   : > { %p1940_p7 = pnand %p1939_p4, %p2096_p5 }
 0x980   : > { %p1945_p11 = por %p1944_p10, %p1943_p9 }
 0x981   : > { %p1941_p8 = pneg %p1940_p7 }
 0x982   : > { %p1947_p13 = por %p1946_p12, %p1945_p11 }
 0x984   : > { %p1948_p0 = pnand %p1947_p13, %p1941_p8 }
 0x986   : > { %1951 = shalt.err (!%p1948_p0)
}
 0x987   : > { %1841 = dma.vmem_to_hbm [thread:$0]  (%p2096_p5), %s2350_s26, 128, %s2348_s0, %s1537_s25  }
 0x988 PF: > { %p1847_p1 = scmp.ge.s32.totalorder %s1986_s24, 2  ;;  %s1562_s1 = sand.u32 1, %s1974_s21  }
 0x989   : > { %s1563_s16 = scalar_lea.sflag [#allocation3], %s1562_s1 }
 0x98a   : > { %p1844_p2 = pnand %p1847_p1, %p2100_p6 }
 0x98c   : > { %1969 = dma.done.wait (!%p1844_p2), %s1563_s16, 128  }
 0x98d   : > { %1971 = vsyncadd (!%p1844_p2), %s1563_s16, 4294967168  ;;  %p22_p3 = scmp.ge.s32.totalorder %s2083_s27, 4   ;;  %s2410_s21 = smov %s1978_s22 }
 0x98e   : > { %s2411_s22 = smov %s1982_s23  ;;  %s2412_s23 = smov %s2094_s30 }
 0x98f   : > { %s2413_s24 = smov %s2083_s27  ;;  %24 = sbr.rel (!%p22_p3) target bundleno = 6 (0x6), region = 103 }
 0x996   :  { %1568 = vsyncpa [#allocation3], 1 }
 0x997   :  { %1570 = vsyncpa [#allocation3 + $0x1], 1 }

</bundles_post_ra>
